<compile_context>
chip_gen: v5e
topology: v5e:2x2
jax: 0.10.0
libtpu: 0.0.40
codegen_flags: <defaults>
</compile_context>

<pallas_src>
import jax
import jax.numpy as jnp
import numpy as np
from jax import lax
from jax.experimental import pallas as pl
from jax.experimental.pallas import tpu as pltpu


def _bidaf_kernel(c_ref, q_ref, qmadd_ref, cmadd_ref,
                  cw_ref, qw_ref, cqw_ref, out_ref):
    f32 = jnp.float32
    bf16 = jnp.bfloat16

    bt, lc, _ = c_ref.shape
    odt = out_ref.dtype

    # Block-invariant loads / constants hoisted out of the batch loop.
    cw = cw_ref[...]                        # (1, H) f32
    qw_bf = qw_ref[...].astype(bf16)        # (1, H)
    cqw = cqw_ref[...]                      # (1, H) f32
    ones_c = jnp.ones((lc, 1), bf16)        # for MXU column sums of e2

    # Unrolled loop over the Bt batch elements in this block; every matmul is a
    # plain 2-D MXU op (Bt is kept small by the wrapper's VMEM heuristic).
    for b in range(bt):
        c = c_ref[b]                        # (Lc, H) native dtype (bf16 in demo)
        q = q_ref[b]                        # (Lq, H)
        qmadd = qmadd_ref[b]                # (1, Lq) f32: (1-qmask)*(-1e30) + bias
        cmadd = cmadd_ref[b]                # (Lc, 1) f32: (1-cmask)*(-1e30) + bias

        cf = c.astype(f32)
        c_bf = c.astype(bf16)
        q_bf = q.astype(bf16)

        # --- similarity: s = c@cw + (q@qw)^T + c@(q*cqw)^T  (bias is folded
        #     into the additive mask terms in the wrapper).
        s0 = jnp.sum(cf * cw, axis=-1, keepdims=True)                  # (Lc, 1)
        s1 = lax.dot_general(qw_bf, q_bf, (((1,), (1,)), ((), ())),
                             preferred_element_type=f32)               # (1, Lq)
        qs_bf = (q.astype(f32) * cqw).astype(bf16)                     # (Lq, H)
        s2 = lax.dot_general(c_bf, qs_bf, (((1,), (1,)), ((), ())),
                             preferred_element_type=f32)               # (Lc, Lq)
        s = s2 + s0 + s1                                               # (Lc, Lq)

        # --- masked-softmax numerators (normalization folded into the outputs).
        lgq = s + qmadd
        e1 = jnp.exp(lgq - jnp.max(lgq, axis=-1, keepdims=True))       # (Lc, Lq)
        inv_row = pl.reciprocal(jnp.sum(e1, axis=-1, keepdims=True),
                                approx=True)                           # (Lc, 1)

        lgc = s + cmadd
        e2_bf = jnp.exp(lgc - jnp.max(lgc, axis=0, keepdims=True)).astype(bf16)

        # Column sums of e2 land directly in (Lq, 1) orientation via a ones
        # mat-vec (same dim-0 contraction as the t matmul) -- no transpose and
        # consistent with the bf16 numerators used below.
        col_sum = lax.dot_general(e2_bf, ones_c, (((0,), (0,)), ((), ())),
                                  preferred_element_type=f32)          # (Lq, 1)
        inv_col = pl.reciprocal(col_sum, approx=True)

        # --- attention outputs: a = p1 @ q ; b = p1 @ (p2^T @ c), reassociated
        #     so no (Lc, Lc) intermediate and no p1/p2 materialization.
        e1_bf = e1.astype(bf16)
        a_un = jnp.dot(e1_bf, q_bf, preferred_element_type=f32)        # (Lc, H)
        t_un = lax.dot_general(e2_bf, c_bf, (((0,), (0,)), ((), ())),
                               preferred_element_type=f32)             # (Lq, H)
        t_bf = (t_un * inv_col).astype(bf16)                           # p2^T @ c
        b_un = jnp.dot(e1_bf, t_bf, preferred_element_type=f32)        # (Lc, H)

        a = a_un * inv_row                                             # (Lc, H)
        bb = b_un * inv_row                                            # (Lc, H)

        # --- single lane-dense (Lc, 4H) store for this batch element.
        out_ref[b] = jnp.concatenate(
            [c.astype(odt), a.astype(odt),
             (cf * a).astype(odt), (cf * bb).astype(odt)], axis=-1)


def _vmem_capacity_bytes():
    """Physical per-core VMEM, with a conservative (v7x) fallback."""
    try:
        return int(getattr(pltpu.get_tpu_info(), "vmem_capacity_bytes", 64 << 20))
    except Exception:
        return 64 << 20


def _block_vmem_bytes(bt, lc, lq, h, in_bytes, out_bytes):
    """Rough per-step VMEM: double-buffered I/O blocks + live f32 temporaries."""
    io = 2 * bt * ((lc + lq) * h * in_bytes          # c, q blocks
                   + (lc + lq) * 4                   # mask-bias blocks
                   + lc * 4 * h * out_bytes)         # output block
    live = bt * (3 * lc * lq * 4 + 6 * lc * h * 4 + 2 * lq * h * 4)
    return io + live


def _pick_block_b(batch, lc, lq, h, in_bytes, out_bytes, budget):
    """Largest divisor of `batch` whose block fits `budget`, keeping >= 2 grid
    steps when batch >= 2 so both v7x TensorCores get 'parallel' work."""
    best = 1
    for bt in range(1, batch + 1):
        if batch % bt:
            continue
        if batch >= 2 and batch // bt < 2:
            break
        if _block_vmem_bytes(bt, lc, lq, h, in_bytes, out_bytes) > budget:
            break
        best = bt
    return best


def bidaf_attention(context, context_mask, question, question_mask,
                    c_weight, q_weight, cq_weight, bias,
                    *, block_b=None, out_dtype=None):
    """Eval-mode BiDAF attention forward.

    context: (B, Lc, H); question: (B, Lq, H); masks: (B, Lc) / (B, Lq).
    Returns (B, Lc, 4*H) in `out_dtype` (default: context.dtype).
    """
    B, Lc, H = context.shape
    Lq = question.shape[1]
    out_dtype = jnp.dtype(out_dtype if out_dtype is not None else context.dtype)
    in_bytes = jnp.dtype(context.dtype).itemsize
    out_bytes = out_dtype.itemsize

    # Additive mask biases with the scalar bias folded in: unmasked -> +bias,
    # masked -> -1e30 (bias negligible). Same masked softmax as
    # mask*s + (1-mask)*(-1e30) with bias added to s, at 1 add/elem in-kernel.
    neg = jnp.float32(-1e30)
    bias_s = bias.reshape(()).astype(jnp.float32)
    qmadd = ((1.0 - question_mask.astype(jnp.float32)) * neg + bias_s).reshape(B, 1, Lq)
    cmadd = ((1.0 - context_mask.astype(jnp.float32)) * neg + bias_s).reshape(B, Lc, 1)

    cw = c_weight.reshape(1, H).astype(jnp.float32)
    qw = q_weight.reshape(1, H).astype(jnp.float32)
    cqw = cq_weight.reshape(1, H).astype(jnp.float32)

    # Explicit VMEM budget: v5e/v6e default scoped limits are only 16/32 MiB of
    # 128 MiB physical; v7x has 64 MiB physical so keep headroom (~48 MiB).
    vmem_cap = _vmem_capacity_bytes()
    vmem_limit = min(int(0.75 * vmem_cap), 96 * 1024 * 1024)

    if block_b is None:
        block_b = _pick_block_b(B, Lc, Lq, H, in_bytes, out_bytes,
                                budget=vmem_limit // 2)
    assert B % block_b == 0, "block_b must divide the batch size"
    grid = (B // block_b,)

    return pl.pallas_call(
        _bidaf_kernel,
        out_shape=jax.ShapeDtypeStruct((B, Lc, 4 * H), out_dtype),
        grid_spec=pltpu.PrefetchScalarGridSpec(
            num_scalar_prefetch=0,
            grid=grid,
            in_specs=[
                pl.BlockSpec((block_b, Lc, H), lambda i: (i, 0, 0)),   # context (native dtype)
                pl.BlockSpec((block_b, Lq, H), lambda i: (i, 0, 0)),   # question (native dtype)
                pl.BlockSpec((block_b, 1, Lq), lambda i: (i, 0, 0)),   # question mask bias
                pl.BlockSpec((block_b, Lc, 1), lambda i: (i, 0, 0)),   # context mask bias
                pl.BlockSpec((1, H), lambda i: (0, 0)),                # c_weight
                pl.BlockSpec((1, H), lambda i: (0, 0)),                # q_weight
                pl.BlockSpec((1, H), lambda i: (0, 0)),                # cq_weight
            ],
            out_specs=pl.BlockSpec((block_b, Lc, 4 * H), lambda i: (i, 0, 0)),
        ),
        compiler_params=pltpu.CompilerParams(
            dimension_semantics=("parallel",),   # batch blocks shard across TCs
            vmem_limit_bytes=vmem_limit),
    )(context, question, qmadd, cmadd, cw, qw, cqw)


def bidaf_reference(context, context_mask, question, question_mask,
                    c_weight, q_weight, cq_weight, bias):
    """Pure-JAX f32 reference matching the PyTorch forward (eval mode)."""
    B, Lc, H = context.shape
    Lq = question.shape[1]
    c = context.astype(jnp.float32)
    q = question.astype(jnp.float32)
    s0 = c @ c_weight.reshape(H, 1)                                   # (B, Lc, 1)
    s1 = jnp.swapaxes(q @ q_weight.reshape(H, 1), 1, 2)               # (B, 1, Lq)
    s2 = jnp.einsum('bch,bqh->bcq', c * cq_weight.reshape(1, 1, H), q)
    s = s0 + s1 + s2 + bias.reshape(())
    qm = question_mask.astype(jnp.float32).reshape(B, 1, Lq)
    cm = context_mask.astype(jnp.float32).reshape(B, Lc, 1)
    lq = qm * s + (1.0 - qm) * (-1e30)
    lc = cm * s + (1.0 - cm) * (-1e30)
    p1 = jax.nn.softmax(lq, axis=2)
    p2 = jax.nn.softmax(lc, axis=1)
    a = jnp.einsum('bcq,bqh->bch', p1, q)
    b = jnp.einsum('bcd,bdh->bch', jnp.einsum('bcq,bdq->bcd', p1, p2), c)
    return jnp.concatenate([c, a, c * a, c * b], axis=-1)


def _xavier_uniform(key, shape, fan_in, fan_out):
    bound = float(np.sqrt(6.0 / (fan_in + fan_out)))
    return jax.random.uniform(key, shape, jnp.float32, -bound, bound)


if __name__ == "__main__":
    B, Lc, Lq, H = 2, 64, 32, 32

    key = jax.random.PRNGKey(0)
    k_c, k_q, k_w1, k_w2, k_w3 = jax.random.split(key, 5)

    # Activations in bf16 (native model dtype): halves c/q read DMA and the
    # (B, Lc, 4H) output writeback relative to f32.
    context = jax.random.normal(k_c, (B, Lc, H), jnp.float32).astype(jnp.bfloat16)
    question = jax.random.normal(k_q, (B, Lq, H), jnp.float32).astype(jnp.bfloat16)

    # masks: per-batch valid lengths
    c_lens = jnp.array([Lc, Lc - 7], jnp.int32)
    q_lens = jnp.array([Lq, Lq - 5], jnp.int32)
    context_mask = (jnp.arange(Lc)[None, :] < c_lens[:, None]).astype(jnp.float32)
    question_mask = (jnp.arange(Lq)[None, :] < q_lens[:, None]).astype(jnp.float32)

    # deterministic parameter init (matches the __init__ shapes)
    c_weight = _xavier_uniform(k_w1, (H, 1), fan_in=1, fan_out=H)
    q_weight = _xavier_uniform(k_w2, (H, 1), fan_in=1, fan_out=H)
    cq_weight = _xavier_uniform(k_w3, (1, 1, H), fan_in=H, fan_out=H)
    bias = jnp.zeros((1,), jnp.float32)

    out = bidaf_attention(context, context_mask, question, question_mask,
                          c_weight, q_weight, cq_weight, bias)
    out = jax.block_until_ready(out)
    assert out.shape == (B, Lc, 4 * H)
    assert out.dtype == context.dtype

    ref = bidaf_reference(context, context_mask, question, question_mask,
                          c_weight, q_weight, cq_weight, bias)
    # Tolerance loosened vs. the pure-f32 reference: bf16 MXU operands, bf16
    # output storage, reassociated b = p1 @ (p2^T @ c), and approx reciprocals.
    # Genuine bugs would produce O(1) errors, far above this threshold.
    np.testing.assert_allclose(np.asarray(out.astype(jnp.float32)),
                               np.asarray(ref), rtol=5e-2, atol=5e-2)
    print("KERNEL_OK")
</pallas_src>

<mosaic_0001>
module attributes {stable_mosaic.version = 11 : i64} {
  func.func @_bidaf_kernel(%arg0: i32, %arg1: memref<1x64x32xbf16, #tpu.memory_space<vmem>>, %arg2: memref<1x32x32xbf16, #tpu.memory_space<vmem>>, %arg3: memref<1x1x32xf32, #tpu.memory_space<vmem>>, %arg4: memref<1x64x1xf32, #tpu.memory_space<vmem>>, %arg5: memref<1x32xf32, #tpu.memory_space<vmem>>, %arg6: memref<1x32xf32, #tpu.memory_space<vmem>>, %arg7: memref<1x32xf32, #tpu.memory_space<vmem>>, %arg8: memref<1x64x128xbf16, #tpu.memory_space<vmem>>) attributes {dimension_semantics = [#tpu.dimension_semantics<parallel>], iteration_bounds = array<i64: 2>, scalar_prefetch = 0 : i64, scratch_operands = 0 : i64, tpu.core_type = #tpu.core_type<tc>, window_params = [{transform_indices = @transform_0, window_bounds = array<i64: 1, 64, 32>}, {transform_indices = @transform_1, window_bounds = array<i64: 1, 32, 32>}, {transform_indices = @transform_2, window_bounds = array<i64: 1, 1, 32>}, {transform_indices = @transform_3, window_bounds = array<i64: 1, 64, 1>}, {pipeline_mode = #tpu.pipeline_mode<synchronous>, transform_indices = @transform_4, window_bounds = array<i64: 1, 32>}, {pipeline_mode = #tpu.pipeline_mode<synchronous>, transform_indices = @transform_5, window_bounds = array<i64: 1, 32>}, {pipeline_mode = #tpu.pipeline_mode<synchronous>, transform_indices = @transform_6, window_bounds = array<i64: 1, 32>}, {transform_indices = @transform_7, window_bounds = array<i64: 1, 64, 128>}]} {
    %c0 = arith.constant 0 : index
    %c0_0 = arith.constant 0 : index
    %0 = vector.load %arg5[%c0, %c0_0] : memref<1x32xf32, #tpu.memory_space<vmem>>, vector<1x32xf32>
    %c0_1 = arith.constant 0 : index
    %c0_2 = arith.constant 0 : index
    %1 = vector.load %arg6[%c0_1, %c0_2] : memref<1x32xf32, #tpu.memory_space<vmem>>, vector<1x32xf32>
    %2 = arith.truncf %1 : vector<1x32xf32> to vector<1x32xbf16>
    %c0_3 = arith.constant 0 : index
    %c0_4 = arith.constant 0 : index
    %3 = vector.load %arg7[%c0_3, %c0_4] : memref<1x32xf32, #tpu.memory_space<vmem>>, vector<1x32xf32>
    %cst = arith.constant 1.000000e+00 : bf16
    %4 = vector.broadcast %cst : bf16 to vector<64x1xbf16>
    %c0_5 = arith.constant 0 : index
    %c0_6 = arith.constant 0 : index
    %c0_7 = arith.constant 0 : index
    %5 = vector.load %arg1[%c0_5, %c0_6, %c0_7] : memref<1x64x32xbf16, #tpu.memory_space<vmem>>, vector<1x64x32xbf16>
    %6 = vector.shape_cast %5 : vector<1x64x32xbf16> to vector<64x32xbf16>
    %c0_8 = arith.constant 0 : index
    %c0_9 = arith.constant 0 : index
    %c0_10 = arith.constant 0 : index
    %7 = vector.load %arg2[%c0_8, %c0_9, %c0_10] : memref<1x32x32xbf16, #tpu.memory_space<vmem>>, vector<1x32x32xbf16>
    %8 = vector.shape_cast %7 : vector<1x32x32xbf16> to vector<32x32xbf16>
    %c0_11 = arith.constant 0 : index
    %c0_12 = arith.constant 0 : index
    %c0_13 = arith.constant 0 : index
    %9 = vector.load %arg3[%c0_11, %c0_12, %c0_13] : memref<1x1x32xf32, #tpu.memory_space<vmem>>, vector<1x1x32xf32>
    %10 = vector.shape_cast %9 : vector<1x1x32xf32> to vector<1x32xf32>
    %c0_14 = arith.constant 0 : index
    %c0_15 = arith.constant 0 : index
    %c0_16 = arith.constant 0 : index
    %11 = vector.load %arg4[%c0_14, %c0_15, %c0_16] : memref<1x64x1xf32, #tpu.memory_space<vmem>>, vector<1x64x1xf32>
    %12 = vector.shape_cast %11 : vector<1x64x1xf32> to vector<64x1xf32>
    %13 = arith.extf %6 : vector<64x32xbf16> to vector<64x32xf32>
    %14 = vector.broadcast %0 : vector<1x32xf32> to vector<64x32xf32>
    %15 = arith.mulf %13, %14 : vector<64x32xf32>
    %cst_17 = arith.constant dense<0.000000e+00> : vector<64xf32>
    %16 = vector.multi_reduction <add>, %15, %cst_17 [1] : vector<64x32xf32> to vector<64xf32>
    %17 = vector.shape_cast %16 : vector<64xf32> to vector<64x1xf32>
    %cst_18 = arith.constant dense<0.000000e+00> : vector<1x32xf32>
    %18 = tpu.matmul %2, %8, %cst_18 {dimension_numbers = #tpu.dot_dimension_numbers<[1], [1], [0], [0], [0, 0, 1, 0], [], []>} : vector<1x32xbf16>, vector<32x32xbf16>, vector<1x32xf32> -> vector<1x32xf32>
    %19 = arith.extf %8 : vector<32x32xbf16> to vector<32x32xf32>
    %20 = vector.broadcast %3 : vector<1x32xf32> to vector<32x32xf32>
    %21 = arith.mulf %19, %20 : vector<32x32xf32>
    %22 = arith.truncf %21 : vector<32x32xf32> to vector<32x32xbf16>
    %cst_19 = arith.constant dense<0.000000e+00> : vector<64x32xf32>
    %23 = tpu.matmul %6, %22, %cst_19 {dimension_numbers = #tpu.dot_dimension_numbers<[1], [1], [0], [0], [0, 0, 1, 0], [], []>} : vector<64x32xbf16>, vector<32x32xbf16>, vector<64x32xf32> -> vector<64x32xf32>
    %24 = vector.broadcast %17 : vector<64x1xf32> to vector<64x32xf32>
    %25 = arith.addf %23, %24 : vector<64x32xf32>
    %26 = vector.broadcast %18 : vector<1x32xf32> to vector<64x32xf32>
    %27 = arith.addf %25, %26 : vector<64x32xf32>
    %28 = vector.broadcast %10 : vector<1x32xf32> to vector<64x32xf32>
    %29 = arith.addf %27, %28 : vector<64x32xf32>
    %cst_20 = arith.constant dense<0xFF800000> : vector<64xf32>
    %30 = vector.multi_reduction <maximumf>, %29, %cst_20 [1] : vector<64x32xf32> to vector<64xf32>
    %31 = vector.shape_cast %30 : vector<64xf32> to vector<64x1xf32>
    %32 = vector.broadcast %31 : vector<64x1xf32> to vector<64x32xf32>
    %33 = arith.subf %29, %32 : vector<64x32xf32>
    %34 = math.exp %33 : vector<64x32xf32>
    %cst_21 = arith.constant dense<0.000000e+00> : vector<64xf32>
    %35 = vector.multi_reduction <add>, %34, %cst_21 [1] : vector<64x32xf32> to vector<64xf32>
    %36 = vector.shape_cast %35 : vector<64xf32> to vector<64x1xf32>
    %37 = tpu.reciprocal %36 {approx = true} : vector<64x1xf32> -> vector<64x1xf32>
    %38 = vector.broadcast %12 : vector<64x1xf32> to vector<64x32xf32>
    %39 = arith.addf %27, %38 : vector<64x32xf32>
    %cst_22 = arith.constant dense<0xFF800000> : vector<32xf32>
    %40 = vector.multi_reduction <maximumf>, %39, %cst_22 [0] : vector<64x32xf32> to vector<32xf32>
    %41 = vector.shape_cast %40 : vector<32xf32> to vector<1x32xf32>
    %42 = vector.broadcast %41 : vector<1x32xf32> to vector<64x32xf32>
    %43 = arith.subf %39, %42 : vector<64x32xf32>
    %44 = math.exp %43 : vector<64x32xf32>
    %45 = arith.truncf %44 : vector<64x32xf32> to vector<64x32xbf16>
    %cst_23 = arith.constant dense<0.000000e+00> : vector<32x1xf32>
    %46 = tpu.matmul %45, %4, %cst_23 {dimension_numbers = #tpu.dot_dimension_numbers<[0], [0], [1], [1], [0, 1, 1, 1], [], []>} : vector<64x32xbf16>, vector<64x1xbf16>, vector<32x1xf32> -> vector<32x1xf32>
    %47 = tpu.reciprocal %46 {approx = true} : vector<32x1xf32> -> vector<32x1xf32>
    %48 = arith.truncf %34 : vector<64x32xf32> to vector<64x32xbf16>
    %cst_24 = arith.constant dense<0.000000e+00> : vector<64x32xf32>
    %49 = tpu.matmul %48, %8, %cst_24 {dimension_numbers = #tpu.dot_dimension_numbers<[1], [0], [0], [1], [0, 0, 1, 1], [], []>} : vector<64x32xbf16>, vector<32x32xbf16>, vector<64x32xf32> -> vector<64x32xf32>
    %cst_25 = arith.constant dense<0.000000e+00> : vector<32x32xf32>
    %50 = tpu.matmul %45, %6, %cst_25 {dimension_numbers = #tpu.dot_dimension_numbers<[0], [0], [1], [1], [0, 1, 1, 1], [], []>} : vector<64x32xbf16>, vector<64x32xbf16>, vector<32x32xf32> -> vector<32x32xf32>
    %51 = vector.broadcast %47 : vector<32x1xf32> to vector<32x32xf32>
    %52 = arith.mulf %50, %51 : vector<32x32xf32>
    %53 = arith.truncf %52 : vector<32x32xf32> to vector<32x32xbf16>
    %cst_26 = arith.constant dense<0.000000e+00> : vector<64x32xf32>
    %54 = tpu.matmul %48, %53, %cst_26 {dimension_numbers = #tpu.dot_dimension_numbers<[1], [0], [0], [1], [0, 0, 1, 1], [], []>} : vector<64x32xbf16>, vector<32x32xbf16>, vector<64x32xf32> -> vector<64x32xf32>
    %55 = vector.broadcast %37 : vector<64x1xf32> to vector<64x32xf32>
    %56 = arith.mulf %49, %55 : vector<64x32xf32>
    %57 = vector.broadcast %37 : vector<64x1xf32> to vector<64x32xf32>
    %58 = arith.mulf %54, %57 : vector<64x32xf32>
    %59 = arith.truncf %56 : vector<64x32xf32> to vector<64x32xbf16>
    %60 = arith.mulf %13, %56 : vector<64x32xf32>
    %61 = arith.truncf %60 : vector<64x32xf32> to vector<64x32xbf16>
    %62 = arith.mulf %13, %58 : vector<64x32xf32>
    %63 = arith.truncf %62 : vector<64x32xf32> to vector<64x32xbf16>
    %64 = tpu.concatenate %6, %59, %61, %63 in 1 : vector<64x32xbf16>, vector<64x32xbf16>, vector<64x32xbf16>, vector<64x32xbf16> -> vector<64x128xbf16>
    %c0_27 = arith.constant 0 : index
    %c0_28 = arith.constant 0 : index
    %c0_29 = arith.constant 0 : index
    %65 = vector.load %arg8[%c0_27, %c0_28, %c0_29] : memref<1x64x128xbf16, #tpu.memory_space<vmem>>, vector<1x64x128xbf16>
    %66 = vector.shape_cast %65 : vector<1x64x128xbf16> to vector<64x128xbf16>
    %67 = vector.shape_cast %64 : vector<64x128xbf16> to vector<1x64x128xbf16>
    tpu.vector_store %arg8[%c0_27, %c0_28, %c0_29], %67 {strides = array<i32>} : memref<1x64x128xbf16, #tpu.memory_space<vmem>>, vector<1x64x128xbf16>,
    return
  }
  func.func @transform_0(%arg0: i32) -> (i32, i32, i32) {
    %c0_i32 = arith.constant 0 : i32
    %c0_i32_0 = arith.constant 0 : i32
    %c0_i32_1 = arith.constant 0 : i32
    return %arg0, %c0_i32, %c0_i32_0 : i32, i32, i32
  }
  func.func @transform_1(%arg0: i32) -> (i32, i32, i32) {
    %c0_i32 = arith.constant 0 : i32
    %c0_i32_0 = arith.constant 0 : i32
    %c0_i32_1 = arith.constant 0 : i32
    return %arg0, %c0_i32, %c0_i32_0 : i32, i32, i32
  }
  func.func @transform_2(%arg0: i32) -> (i32, i32, i32) {
    %c0_i32 = arith.constant 0 : i32
    %c0_i32_0 = arith.constant 0 : i32
    %c0_i32_1 = arith.constant 0 : i32
    return %arg0, %c0_i32, %c0_i32_0 : i32, i32, i32
  }
  func.func @transform_3(%arg0: i32) -> (i32, i32, i32) {
    %c0_i32 = arith.constant 0 : i32
    %c0_i32_0 = arith.constant 0 : i32
    %c0_i32_1 = arith.constant 0 : i32
    return %arg0, %c0_i32, %c0_i32_0 : i32, i32, i32
  }
  func.func @transform_4(%arg0: i32) -> (i32, i32) {
    %c0_i32 = arith.constant 0 : i32
    %c0_i32_0 = arith.constant 0 : i32
    %c0_i32_1 = arith.constant 0 : i32
    return %c0_i32, %c0_i32_0 : i32, i32
  }
  func.func @transform_5(%arg0: i32) -> (i32, i32) {
    %c0_i32 = arith.constant 0 : i32
    %c0_i32_0 = arith.constant 0 : i32
    %c0_i32_1 = arith.constant 0 : i32
    return %c0_i32, %c0_i32_0 : i32, i32
  }
  func.func @transform_6(%arg0: i32) -> (i32, i32) {
    %c0_i32 = arith.constant 0 : i32
    %c0_i32_0 = arith.constant 0 : i32
    %c0_i32_1 = arith.constant 0 : i32
    return %c0_i32, %c0_i32_0 : i32, i32
  }
  func.func @transform_7(%arg0: i32) -> (i32, i32, i32) {
    %c0_i32 = arith.constant 0 : i32
    %c0_i32_0 = arith.constant 0 : i32
    %c0_i32_1 = arith.constant 0 : i32
    return %arg0, %c0_i32, %c0_i32_0 : i32, i32, i32
  }
}

</mosaic_0001>

<bundles_post_ra>
// kernel: tpu_custom_call.1
= control target key start
LH: loop header
LB: loop body
LE: loop exit
PB: predicated region body
PF: predicated region fallthrough
CT: control target
= control target key end

     0   :  { %12 = vsyncpa [#allocation3], 0  ;;  %s1825_s0 = inlined_call_operand.vmem [shape: bf16[2,64,32], index: 0, kind: input, shape index: {}]   ;;  %s1826_s1 = inlined_call_operand.vmem [shape: bf16[2,32,32], index: 1, kind: input, shape index: {}]   ;;  %s1827_s2 = inlined_call_operand.vmem [shape: f32[2,1,32], index: 2, kind: input, shape index: {}]   ;;  %s1828_s3 = inlined_call_operand.vmem [shape: f32[2,64,1], index: 3, kind: input, shape index: {}]   ;;  %s1829_s4 = inlined_call_operand.vmem [shape: f32[1,32], index: 4, kind: input, shape index: {}]   ;;  %s1830_s5 = inlined_call_operand.vmem [shape: f32[1,32], index: 5, kind: input, shape index: {}]   ;;  %s1831_s6 = inlined_call_operand.vmem [shape: f32[1,32], index: 6, kind: input, shape index: {}]   ;;  %s1832_s7 = inlined_call_operand.hbm [shape: bf16[2,64,128], index: 7, kind: output, shape index: {}]  }
   0x1   :  { %14 = vsyncpa [#allocation3 + $0x1], 0  ;;  %s1478_s24 = smov 0   ;;  %s1480_s25 = smov 0  }
   0x2   :  { %s1482_s26 = smov 0   ;;  %s1484_s27 = smov 0  }
   0x3 LB: > { %s1499_s28 = sadd.s32 4294967295, %s1430_s27   ;;  %s1194_s29 = sadd.s32 4294967294, %s1430_s27   ;;  %s1430_s27 = sphi %s1484_s27, %s1838_s27   ;;  %s1426_s26 = sphi %s1482_s26, %s1837_s26   ;;  %s1422_s25 = sphi %s1480_s25, %s1836_s25   ;;  %s1418_s24 = sphi %s1478_s24, %s1835_s24  }
   0x4   : > { %s1503_s30 = sadd.s32 1, %s1430_s27   ;;  %s194_s8 = sadd.s32 1, %s1426_s26 }
   0x5   : > { %s191_s9 = ssub.s32 %s1430_s27, %s1503_s30  ;;  %p204_p0 = scmp.ne.s32.totalorder %s1426_s26, %s1422_s25 }
   0x6   : > { %p192_p1 = scmp.eq.s32.totalorder %s191_s9, 0  ;;  %p205_p2 = scmp.eq.s32.totalorder %s1499_s28, 1 }
   0x7   : > { %p210_p3 = scmp.ne.s32.totalorder %s1422_s25, %s1418_s24  ;;  %p211_p4 = scmp.eq.s32.totalorder %s1194_s29, 1 }
   0x8   : > { %s1514_s10 = scalar_select %p192_p1, %s1426_s26, %s194_s8  }
   0x9   : > { %p1516_p5 = por %p205_p2, %p204_p0  ;;  %p1520_p6 = por %p211_p4, %p210_p3 }
   0xa   : > { %p1197_p7 = scmp.ge.s32.totalorder %s1430_s27, 1  ;;  %p268_p8 = scmp.lt.s32.totalorder %s1430_s27, 3 }
   0xc   : > { %p269_p9 = pnand %p1197_p7, %p268_p8 }
   0xd   : > { %p313_p10 = scmp.lt.s32.totalorder (!%p269_p9), %s1499_s28, 1  ;;  %s1436_s8 = smov (!%p269_p9), 96  }
   0xe   : > { %272 = sbr.rel (%p269_p9) target bundleno = 1084 (0x43c), region = 48  ;;  %s310_s9 = sand.u32 (!%p269_p9), 1, %s1422_s25  }
   0xf   : > { %s1260_s16 = sshll.u32 (!%p269_p9), %s1499_s28, 5 }
  0x10   : > { %s1095_s20 = scalar_lea.hbm (!%p269_p9), %s1832_s7, %s1260_s16 }
  0x13   : > { %s1528_s13 = scalar_select %p313_p10, %s1499_s28, 1  ;;  %vm377_vm0 = vcmask 261120   ;;  %v1309_v0 = vld [vmem:[%s1831_s6] ss:$0 sm:$0xff]  ;;  %v1432_v37 = vmov 0   ;;  %vm727_vm1 = vcmask 523264  }
  0x14   : > { %v1310_v1 = vld [vmem:[%s1829_s4] ss:$0 sm:$0xff]  ;;  %1307 = vset.pattern.permute.xlu0 %v1432_v37  ;;  %1308 = vset.pattern.permute.xlu1 %v1432_v37  ;;  %vm1038_vm2 = vcmask 785408  }
  0x15   : > { %s1251_s14 = sshll.u32 %s1528_s13, 5  ;;  %s1252_s15 = sshll.u32 %s1528_s13, 4  ;;  %v334_v39 = vld [vmem:[%s1830_s5] sm:$0x1]  ;;  %1306 = vset.pattern.permute.xlu2 %v1432_v37 }
  0x16   : > { %s1535_s18 = scalar_lea.vmem %s1825_s0, %s1251_s14  ;;  %s322_s21 = scalar_lea.vmem %s1826_s1, %s1252_s15  ;;  %v335_v45 = vpack.c.bf16 %v334_v39, %v334_v39 }
  0x17   : > { %v1259_v2 = vld [vmem:[%s322_s21 + $0x8] sm:$0xff]  ;;  %v337_v4 = vld [vmem:[%s1535_s18] sm:$0xff]   ;;  %v341_v14 = vld [vmem:[%s1535_s18 + $0x10] sm:$0xff]   ;;  %s325_s17 = scalar_lea.vmem %s1827_s2, %s1528_s13  ;;  %s1253_s19 = sshll.u32 %s1528_s13, 6 }
  0x18   : > { %v347_v3 = vld [vmem:[%s322_s21 + $0x8] sm:$0xff]   ;;  %v1547_v7 = vunpack.c.l.bf16 %v337_v4  ;;  %v345_v9 = vld [vmem:[%s322_s21] sm:$0xff]   ;;  %v419_v10 = vsel %vm377_vm0, %v1259_v2, 0  ;;  %781 = vmatpush.bf16.msra.mxu3 %v1259_v2  ;;  %v1555_v18 = vunpack.c.h.bf16 %v337_v4  ;;  %v1559_v25 = vunpack.c.l.bf16 %v341_v14  ;;  %v343_v34 = vld [vmem:[%s1535_s18 + $0x18] sm:$0xff]   ;;  %s330_s22 = scalar_lea.vmem %s1828_s3, %s1253_s19  ;;  %s1434_s13 = smov 32  }
  0x19   : > { %v436_v5 = vunpack.c.l.bf16 %v347_v3  ;;  %v437_v6 = vunpack.c.h.bf16 %v347_v3  ;;  %v339_v8 = vld [vmem:[%s1535_s18 + $0x8] sm:$0xff]   ;;  %v434_v12 = vunpack.c.l.bf16 %v345_v9  ;;  %v435_v13 = vunpack.c.h.bf16 %v345_v9  ;;  %427 = vmatpush.bf16.xpose.msra.mxu0 %v419_v10  ;;  %v1258_v20 = vld [vmem:[%s322_s21] sm:$0xff]  ;;  %v352_v55 = vld [vmem:[%s330_s22 + $0x10] sm:$0xff]  ;;  %s1198_s14 = sshll.u32 %s310_s9, 5  ;;  %s1098_s21 = sshll.u32 %s1095_s20, 4  ;;  %s1099_s21 = int_to_ptr.hbm [resolvable:$true] %s1098_s21 }
  0x1a   : > { %v1551_v11 = vunpack.c.l.bf16 %v339_v8  ;;  %v369_v17 = vmul.f32 %v1310_v1, %v1547_v7  ;;  %v1561_v26 = vunpack.c.h.bf16 %v339_v8  ;;  %v370_v29 = vmul.f32 %v1310_v1, %v1555_v18  ;;  %v1589_v49 = vld [vmem:[%s1535_s18] sm:$0xff]  ;;  %v1601_v52 = vld [vmem:[%s1535_s18 + $0x8] sm:$0xff]  ;;  %v353_v56 = vld [vmem:[%s330_s22 + $0x18] sm:$0xff]  ;;  %s1769_s15 = scalar_lea.vmem [#allocation2], %s1198_s14  ;;  %s1382_s23 = sshra.s32 %s1099_s21, 4  ;;  %s1383_s23 = int_to_ptr.hbm [resolvable:$true] %s1382_s23 }
  0x1b   : > { %v443_v15 = vmul.f32 %v1309_v0, %v436_v5  ;;  %v444_v16 = vmul.f32 %v1309_v0, %v437_v6  ;;  %v441_v21 = vmul.f32 %v1309_v0, %v434_v12  ;;  %v442_v22 = vmul.f32 %v1309_v0, %v435_v13  ;;  %v351_v53 = vld [vmem:[%s330_s22 + $0x8] sm:$0xff]  ;;  %v350_v54 = vld [vmem:[%s330_s22] sm:$0xff]  ;;  %v1609_v57 = vld [vmem:[%s1535_s18 + $0x10] sm:$0xff]  ;;  %s1096_s28 = sshll.u32 %s1769_s15, 4  ;;  %s1384_s29 = scalar_lea.hbm %s1383_s23, 32  ;;  %s1097_s28 = int_to_ptr.vmem [resolvable:$true] %s1096_s28 }
  0x1c   : > { %v371_v19 = vmul.f32 %v1310_v1, %v1551_v11  ;;  %v378_v24 = vsel %vm377_vm0, %v369_v17, 0.0  ;;  %782 = vmatpush.bf16.msra.mxu3 %v1258_v20  ;;  %v373_v30 = vmul.f32 %v1310_v1, %v1559_v25  ;;  %v1567_v31 = vunpack.c.h.bf16 %v341_v14  ;;  %v355_v58 = vld [vmem:[%s330_s22 + $0x28] sm:$0xff]  ;;  %v354_v59 = vld [vmem:[%s330_s22 + $0x20] sm:$0xff]  ;;  %v357_v60 = vld [vmem:[%s330_s22 + $0x38] sm:$0xff]  ;;  %p1385_p11 = scmp.ne.s32.totalorder %s1383_s23, %s1384_s29  ;;  %s1388_s14 = scalar_lea.hbm %s1832_s7, 64 }
  0x1d   : > { %v446_v23 = vpack.c.bf16 %v444_v16, %v443_v15  ;;  %379 = vadd.xlane.f32.xlu0 %v378_v24  ;;  %v416_v32 = vsel %vm377_vm0, %v1258_v20, 0  ;;  %v372_v33 = vmul.f32 %v1310_v1, %v1561_v26  ;;  %v445_v35 = vpack.c.bf16 %v442_v22, %v441_v21  ;;  %v356_v61 = vld [vmem:[%s330_s22 + $0x30] sm:$0xff]  ;;  %v1614_v62 = vld [vmem:[%s1535_s18 + $0x18] sm:$0xff]  ;;  %v1311_v4 = vld [vmem:[%s325_s17] ss:$0 sm:$0xff]  ;;  %s1435_s18 = smov 64   ;;  %p1389_p0 = scmp.lt.s32.totalorder %s1383_s23, %s1832_s7 }
  0x1e   : > { %v384_v27 = vsel %vm377_vm0, %v371_v19, 0.0  ;;  %v390_v36 = vsel %vm377_vm0, %v373_v30, 0.0  ;;  %v381_v38 = vsel %vm377_vm0, %v370_v29, 0.0  ;;  %v1577_v40 = vunpack.c.l.bf16 %v343_v34  ;;  %s1084_s22 = scalar_lea.sflag [#allocation3], %s310_s9  ;;  %p1386_p12 = pnand %p1385_p11, %p1516_p5 }
  0x1f   : > { %v483_v28 = vsel %vm377_vm0, %v446_v23, 0  ;;  %385 = vadd.xlane.f32.xlu1 %v384_v27  ;;  %391 = vadd.xlane.f32.xlu2 %v390_v36  ;;  %v374_v41 = vmul.f32 %v1310_v1, %v1567_v31  ;;  %v387_v42 = vsel %vm377_vm0, %v372_v33, 0.0  ;;  %v1581_v43 = vunpack.c.h.bf16 %v343_v34  ;;  %p1390_p1 = scmp.lt.s32.totalorder %s1388_s14, %s1384_s29 }
  0x20   : > { %491 = vmatpush.bf16.xpose.msra.mxu1 %v483_v28  ;;  %v480_v44 = vsel %vm377_vm0, %v445_v35, 0  ;;  %v375_v46 = vmul.f32 %v1310_v1, %v1577_v40  ;;  %p1387_p13 = pneg %p1386_p12 }
  0x21   : > { %428 = vmatpush.bf16.xpose.msra.mxu0 %v416_v32  ;;  %v393_v47 = vsel %vm377_vm0, %v374_v41, 0.0  ;;  %v376_v48 = vmul.f32 %v1310_v1, %v1581_v43  ;;  %p1391_p2 = por %p1390_p1, %p1389_p0 }
  0x22   : > { %v396_v50 = vsel %vm377_vm0, %v375_v46, 0.0 }
  0x23   : > { %v399_v51 = vsel %vm377_vm0, %v376_v48, 0.0  ;;  %p1392_p3 = pnand %p1391_p2, %p1387_p13 }
  0x25   : > { %382 = vadd.xlane.f32.xlu0 %v381_v38 }
  0x27   : > { %388 = vadd.xlane.f32.xlu1 %v387_v42  ;;  %394 = vadd.xlane.f32.xlu2 %v393_v47 }
  0x28   : > { %492 = vmatpush.bf16.xpose.msra.mxu1 %v480_v44  ;;  %1213 = vmatmul.msk.bf16.vlgmr.msra.gmra.mxu0 %vm377_vm0, %v335_v45 }
  0x2d   : > { %397 = vadd.xlane.f32.xlu0 %v396_v50 }
  0x2f   : > { %1230 = vmatmul.msk.bf16.vlgmr.msra.gmra.mxu1 %vm377_vm0, %v1589_v49  ;;  %400 = vadd.xlane.f32.xlu1 %v399_v51 }
  0x3f   : > { %1231 = vmatmul.msk.bf16.gmra.mxu1 %vm377_vm0, %v1601_v52  ;;  %616 = vperm.xlu2 %1306, %v350_v54  }
  0x41   : > { %621 = vperm.xlu0 %1307, %v351_v53  }
  0x47   : > { %631 = vperm.xlu2 %1306, %v353_v56  }
  0x48   : > { %626 = vperm.xlu1 %1308, %v352_v55  }
  0x4f   : > { %1232 = vmatmul.msk.bf16.gmra.mxu1 %vm377_vm0, %v1609_v57  ;;  %636 = vperm.xlu2 %1306, %v354_v59  }
  0x50   : > { %641 = vperm.xlu1 %1308, %v355_v58  }
  0x57   : > { %646 = vperm.xlu2 %1306, %v356_v61  }
  0x58   : > { %651 = vperm.xlu1 %1308, %v357_v60  }
  0x5f   : > { %1233 = vmatmul.msk.bf16.gmra.mxu1 %vm377_vm0, %v1614_v62 }
  0x90   : > { %v380_v0 = vpop.xlane.xlu0 %379 }
  0x92   : > { %v392_v9 = vpop.xlane.xlu2 %391  ;;  %v386_v16 = vpop.xlane.xlu1 %385 }
  0x98   : > { %v383_v12 = vpop.xlane.xlu0 %382 }
  0x9a   : > { %v395_v22 = vpop.xlane.xlu2 %394  ;;  %v389_v27 = vpop.xlane.xlu1 %388 }
  0xa0   : > { %v398_v45 = vpop.xlane.xlu0 %397 }
  0xa2   : > { %v617_v32 = vpop.permute.xlu2 %616  ;;  %v401_v34 = vpop.xlane.xlu1 %400 }
  0xa5   : > { %v430_v63 = vpop.f32.mrf.mxu0 }
  0xa6   : > { %v514_v1 = vperm.slane %v430_v63, 0 }
  0xaa   : > { %v632_v38 = vpop.permute.xlu2 %631 }
  0xac   : > { %v494_v2 = vpop.f32.mrf.mxu1 }
  0xad   : > { %v495_v3 = vadd.f32 %v494_v2, %v380_v0  ;;  %v432_v6 = vpop.f32.mrf.mxu0 }
  0xaf   : > { %v515_v5 = vadd.f32 %v514_v1, %v495_v3 }
  0xb1   : > { %v1623_v8 = vadd.f32 %v1311_v4, %v515_v5  ;;  %v654_v3 = vadd.f32 %v617_v32, %v515_v5 }
  0xb2   : > { %v637_v48 = vpop.permute.xlu2 %636 }
  0xb3   : > { %v534_v10 = vsel %vm377_vm0, %v1623_v8, -inf  ;;  %v622_v55 = vpop.permute.xlu0 %621 }
  0xb4   : > { %v496_v13 = vpop.f32.mrf.mxu1  ;;  %535 = vmax.xlane.f32.xlu2 %v534_v10 }
  0xb5   : > { %v497_v14 = vadd.f32 %v496_v13, %v383_v12 }
  0xb7   : > { %v516_v15 = vadd.f32 %v514_v1, %v497_v14 }
  0xb9   : > { %v1627_v17 = vadd.f32 %v1311_v4, %v516_v15  ;;  %v655_v59 = vadd.f32 %v622_v55, %v516_v15 }
  0xba   : > { %v627_v44 = vpop.permute.xlu1 %626  ;;  %v647_v60 = vpop.permute.xlu2 %646 }
  0xbb   : > { %v537_v19 = vsel %vm377_vm0, %v1627_v17, -inf  ;;  %v663_v13 = vsel %vm377_vm0, %v655_v59, -inf }
  0xbc   : > { %v499_v20 = vpop.f32.mrf.mxu1  ;;  %538 = vmax.xlane.f32.xlu1 %v537_v19 }
  0xbd   : > { %v500_v21 = vadd.f32 %v499_v20, %v386_v16 }
  0xbf   : > { %v517_v23 = vadd.f32 %v514_v1, %v500_v21 }
  0xc1   : > { %v1631_v24 = vadd.f32 %v1311_v4, %v517_v23  ;;  %v656_v6 = vadd.f32 %v627_v44, %v517_v23 }
  0xc2   : > { %v642_v53 = vpop.permute.xlu1 %641 }
  0xc3   : > { %v664_v5 = vsel %vm377_vm0, %v656_v6, -inf }
  0xc4   : > { %v501_v28 = vpop.f32.mrf.mxu1 }
  0xc5   : > { %v502_v29 = vadd.f32 %v501_v28, %v389_v27 }
  0xc7   : > { %v518_v30 = vadd.f32 %v514_v1, %v502_v29 }
  0xc9   : > { %v1633_v33 = vadd.f32 %v1311_v4, %v518_v30 }
  0xca   : > { %v652_v14 = vpop.permute.xlu1 %651 }
  0xcc   : > { %v504_v35 = vpop.f32.mrf.mxu1 }
  0xcd   : > { %v505_v36 = vadd.f32 %v504_v35, %v392_v9  ;;  %v657_v9 = vadd.f32 %v632_v38, %v518_v30 }
  0xcf   : > { %v519_v37 = vadd.f32 %v514_v1, %v505_v36  ;;  %v665_v23 = vsel %vm377_vm0, %v657_v9, -inf }
  0xd1   : > { %v1635_v39 = vadd.f32 %v1311_v4, %v519_v37  ;;  %v658_v63 = vadd.f32 %v637_v48, %v519_v37 }
  0xd3   : > { %v666_v16 = vsel %vm377_vm0, %v658_v63, -inf }
  0xd4   : > { %v506_v41 = vpop.f32.mrf.mxu1 }
  0xd5   : > { %v507_v42 = vadd.f32 %v506_v41, %v395_v22  ;;  %v662_v22 = vsel %vm377_vm0, %v654_v3, -inf }
  0xd7   : > { %v520_v46 = vadd.f32 %v514_v1, %v507_v42 }
  0xd9   : > { %v1637_v47 = vadd.f32 %v1311_v4, %v520_v46  ;;  %v1641_v58 = vadd.f32 %v642_v53, %v520_v46 }
  0xdb   : > { %v668_v10 = vsel %vm377_vm0, %v1641_v58, -inf }
  0xdc   : > { %v509_v50 = vpop.f32.mrf.mxu1  ;;  %v669_v21 = vmax.f32 %v663_v13, %v668_v10 }
  0xdd   : > { %v510_v51 = vadd.f32 %v509_v50, %v398_v45 }
  0xdf   : > { %v521_v54 = vadd.f32 %v514_v1, %v510_v51 }
  0xe1   : > { %v1639_v56 = vadd.f32 %v1311_v4, %v521_v54  ;;  %v660_v0 = vadd.f32 %v647_v60, %v521_v54 }
  0xe3   : > { %v670_v19 = vsel %vm377_vm0, %v660_v0, -inf }
  0xe4   : > { %v511_v61 = vpop.f32.mrf.mxu1  ;;  %v671_v28 = vmax.f32 %v664_v5, %v670_v19 }
  0xe5   : > { %v512_v2 = vadd.f32 %v511_v61, %v401_v34 }
  0xe7   : > { %v522_v12 = vadd.f32 %v514_v1, %v512_v2  ;;  %v667_v1 = vmax.f32 %v662_v22, %v666_v16  ;;  %v1433_v22 = vmov 1065369472  }
  0xe8   : > { %738 = vmatpush.bf16.msrb.mxu0 %v1433_v22 }
  0xe9   : > { %v661_v15 = vadd.f32 %v652_v14, %v522_v12  ;;  %v1648_v20 = vadd.f32 %v1311_v4, %v522_v12  ;;  %v674_v30 = vmax.f32 %v667_v1, %v669_v21 }
  0xeb   : > { %v672_v27 = vsel %vm377_vm0, %v661_v15, -inf }
  0xec   : > { %v673_v29 = vmax.f32 %v665_v23, %v672_v27  ;;  %739 = vmatpush.bf16.msrb.mxu0 %v1433_v22 }
  0xee   : > { %v675_v32 = vmax.f32 %v671_v28, %v673_v29 }
  0xf0   : > { %v676_v34 = vmax.f32 %v674_v30, %v675_v32  ;;  %740 = vmatpush.bf16.msrb.mxu0 %v1433_v22 }
  0xf2   : > { %v677_v35 = vrot.slane %v676_v34, 4 }
  0xf4   : > { %v678_v36 = vmax.f32 %v676_v34, %v677_v35  ;;  %741 = vmatpush.bf16.msrb.mxu0 %v1433_v22  ;;  %v546_v34 = vsel %vm377_vm0, %v1635_v39, -inf }
  0xf6   : > { %v679_v37 = vrot.slane %v678_v36, 2 }
  0xf8   : > { %v680_v4 = vmax.f32 %v678_v36, %v679_v37  ;;  %812 = vmatpush.bf16.msra.mxu0 %v1614_v62 }
  0xfa   : > { %v681_v38 = vrot.slane %v680_v4, 1 }
  0xfc   : > { %v682_v41 = vmax.f32 %v680_v4, %v681_v38  ;;  %813 = vmatpush.bf16.msra.mxu0 %v1609_v57 }
  0xfe   : > { %v683_v42 = vsub.f32 %v654_v3, %v682_v41  ;;  %v684_v44 = vsub.f32 %v655_v59, %v682_v41  ;;  %v690_v45 = vsub.f32 %v661_v15, %v682_v41  ;;  %v689_v50 = vsub.f32 %v660_v0, %v682_v41 }
  0xff   : > { %v685_v55 = vsub.f32 %v656_v6, %v682_v41  ;;  %v686_v61 = vsub.f32 %v657_v9, %v682_v41  ;;  %v687_v16 = vsub.f32 %v658_v63, %v682_v41  ;;  %v688_v19 = vsub.f32 %v1641_v58, %v682_v41 }
 0x100   : > { %v691_v46 = vmul.f32 1.442695, %v683_v42  ;;  %v693_v48 = vmul.f32 1.442695, %v684_v44  ;;  %v705_v51 = vmul.f32 1.442695, %v690_v45  ;;  %814 = vmatpush.bf16.msra.mxu0 %v1601_v52 }
 0x101   : > { %v703_v53 = vmul.f32 1.442695, %v689_v50  ;;  %v695_v12 = vmul.f32 1.442695, %v685_v55  ;;  %v697_v3 = vmul.f32 1.442695, %v686_v61 }
 0x102   : > { %1312 = vpow2.f32 %v691_v46  ;;  %v699_v6 = vmul.f32 1.442695, %v687_v16  ;;  %v701_v21 = vmul.f32 1.442695, %v688_v19  ;;  %v540_v46 = vsel %vm377_vm0, %v1631_v24, -inf }
 0x103   : > { %1314 = vpow2.f32 %v693_v48  ;;  %v549_v48 = vsel %vm377_vm0, %v1637_v47, -inf  ;;  %v543_v50 = vsel %vm377_vm0, %v1633_v33, -inf }
 0x104   : > { %1316 = vpow2.f32 %v705_v51  ;;  %815 = vmatpush.bf16.msra.mxu0 %v1589_v49  ;;  %v555_v51 = vsel %vm377_vm0, %v1648_v20, -inf }
 0x105   : > { %1318 = vpow2.f32 %v703_v53  ;;  %v552_v53 = vsel %vm377_vm0, %v1639_v56, -inf }
 0x106   : > { %1320 = vpow2.f32 %v695_v12 }
 0x107   : > { %1322 = vpow2.f32 %v697_v3 }
 0x108   : > { %v1313_v54 = vpop.eup %1312  ;;  %1324 = vpow2.f32 %v699_v6 }
 0x109   : > { %v1315_v60 = vpop.eup %1314  ;;  %1326 = vpow2.f32 %v701_v21 }
 0x10a   : > { %v707_v2 = vpack.c.bf16 %v1315_v60, %v1313_v54  ;;  %v1317_v10 = vpop.eup %1316 }
 0x10b   : > { %v1319_v59 = vpop.eup %1318 }
 0x10c   : > { %711 = vxpose.xlu0.c.b16.start [1/4] (short) (narrow) %v707_v2, 32  ;;  %v710_v13 = vpack.c.bf16 %v1317_v10, %v1319_v59  ;;  %v1321_v0 = vpop.eup %1320 }
 0x10d   : > { %v1323_v14 = vpop.eup %1322 }
 0x10e   : > { %v708_v15 = vpack.c.bf16 %v1323_v14, %v1321_v0  ;;  %v1325_v9 = vpop.eup %1324 }
 0x10f   : > { %v1327_v5 = vpop.eup %1326 }
 0x110   : > { %v709_v1 = vpack.c.bf16 %v1327_v5, %v1325_v9 }
 0x11c   : > { %712 = vxpose.xlu0.c.b16.cont [2/4] (short) (narrow) %v708_v15, 32 }
 0x127   : > { %v536_v23 = vpop.xlane.xlu2 %535 }
 0x128   : > { %v558_v27 = vsub.f32 %v1623_v8, %v536_v23 }
 0x12a   : > { %v566_v58 = vmul.f32 1.442695, %v558_v27 }
 0x12c   : > { %713 = vxpose.xlu0.c.b16.cont [3/4] (short) (narrow) %v709_v1, 32  ;;  %1328 = vpow2.f32 %v566_v58 }
 0x12f   : > { %v539_v63 = vpop.xlane.xlu1 %538 }
 0x130   : > { %v559_v28 = vsub.f32 %v1627_v17, %v539_v63 }
 0x132   : > { %v568_v29 = vmul.f32 1.442695, %v559_v28  ;;  %v1329_v30 = vpop.eup %1328 }
 0x133   : > { %v582_v55 = vsel %vm377_vm0, %v1329_v30, 0.0 }
 0x134   : > { %1330 = vpow2.f32 %v568_v29 }
 0x13a   : > { %v1331_v32 = vpop.eup %1330 }
 0x13b   : > { %v757_v8 = vpack.c.bf16 %v1331_v32, %v1329_v30  ;;  %v585_v54 = vsel %vm377_vm0, %v1331_v32, 0.0 }
 0x13c   : > { %714 = vxpose.xlu0.c.b16.end [4/4] (short) (narrow) %v710_v13, 32 }
 0x13d   : > { %1236 = vmatmul.msk.bf16.vlgmr.msra.gmra.mxu3 %vm377_vm0, %v757_v8 }
 0x1ad   : > { %547 = vmax.xlane.f32.xlu0 %v546_v34 }
 0x1b8   : > { %v719_v35 = vpop.trf.xlu0 }
 0x1b9   : > { %1234 = vmatmul.msk.bf16.vlgmr.msrb.gmra.mxu0 %vm727_vm1, %v719_v35 }
 0x1c8   : > { %v720_v17 = vpop.trf.xlu0 }
 0x1c9   : > { %1235 = vmatmul.msk.bf16.gmra.mxu0 %vm727_vm1, %v720_v17 }
 0x1d9   : > { %1240 = vmatmul.msk.bf16.vlgmr.msra.gmra.mxu0 %vm727_vm1, %v719_v35 }
 0x1e9   : > { %1241 = vmatmul.msk.bf16.gmra.mxu0 %vm727_vm1, %v720_v17 }
 0x220   : > { %v548_v21 = vpop.xlane.xlu0 %547 }
 0x221   : > { %v562_v5 = vsub.f32 %v1635_v39, %v548_v21 }
 0x223   : > { %v574_v27 = vmul.f32 1.442695, %v562_v5 }
 0x236   : > { %v743_v36 = vpop.f32.mrf.mxu0 }
 0x237   : > { %1332 = vrcp.f32 %v743_v36 }
 0x23d   : > { %v1333_v37 = vpop.eup %1332 }
 0x23e   : > { %829 = vperm.xlu2 %1306, %v1333_v37   ;;  %v745_v4 = vpop.f32.mrf.mxu0 }
 0x23f   : > { %1334 = vrcp.f32 %v745_v4  ;;  %v784_v4 = vpop.f32.mrf.mxu3 }
 0x245   : > { %v1335_v38 = vpop.eup %1334 }
 0x246   : > { %834 = vperm.xlu1 %1308, %v1335_v38   ;;  %v748_v41 = vpop.f32.mrf.mxu0 }
 0x247   : > { %1336 = vrcp.f32 %v748_v41 }
 0x24d   : > { %v1337_v42 = vpop.eup %1336 }
 0x24e   : > { %839 = vperm.xlu2 %1306, %v1337_v42   ;;  %v750_v44 = vpop.f32.mrf.mxu0 }
 0x24f   : > { %1338 = vrcp.f32 %v750_v44 }
 0x255   : > { %v1339_v45 = vpop.eup %1338 }
 0x256   : > { %844 = vperm.xlu1 %1308, %v1339_v45   ;;  %v817_v60 = vpop.f32.mrf.mxu0 }
 0x25e   : > { %v819_v61 = vpop.f32.mrf.mxu0 }
 0x266   : > { %v822_v2 = vpop.f32.mrf.mxu0 }
 0x26e   : > { %v824_v59 = vpop.f32.mrf.mxu0 }
 0x277   : > { %541 = vmax.xlane.f32.xlu2 %v540_v46 }
 0x27f   : > { %550 = vmax.xlane.f32.xlu2 %v549_v48 }
 0x280   : > { %544 = vmax.xlane.f32.xlu1 %v543_v50  ;;  %v786_v50 = vpop.f32.mrf.mxu3 }
 0x287   : > { %556 = vmax.xlane.f32.xlu2 %v555_v51 }
 0x288   : > { %553 = vmax.xlane.f32.xlu1 %v552_v53 }
 0x28f   : > { %586 = vadd.xlane.f32.xlu2 %v585_v54 }
 0x290   : > { %583 = vadd.xlane.f32.xlu1 %v582_v55 }
 0x298   : > { %v830_v10 = vpop.permute.xlu2 %829 }
 0x299   : > { %v847_v15 = vmul.f32 %v830_v10, %v817_v60 }
 0x2a8   : > { %v840_v3 = vpop.permute.xlu2 %839 }
 0x2a9   : > { %v849_v0 = vmul.f32 %v840_v3, %v822_v2 }
 0x2b8   : > { %v835_v12 = vpop.permute.xlu1 %834 }
 0x2b9   : > { %v848_v16 = vmul.f32 %v835_v12, %v819_v61 }
 0x2bb   : > { %v851_v6 = vpack.c.bf16 %v848_v16, %v847_v15 }
 0x2c8   : > { %v845_v13 = vpop.permute.xlu1 %844 }
 0x2c9   : > { %v850_v14 = vmul.f32 %v845_v13, %v824_v59 }
 0x2cb   : > { %v852_v19 = vpack.c.bf16 %v850_v14, %v849_v0 }
 0x2cd   : > { %859 = vmatpush.bf16.msra.mxu2 %v852_v19 }
 0x2d1   : > { %860 = vmatpush.bf16.msra.mxu2 %v851_v6 }
 0x2d4   : > { %1242 = vmatmul.msk.bf16.vlgmr.msra.gmra.mxu2 %vm377_vm0, %v757_v8 }
 0x2ea   : > { %v542_v22 = vpop.xlane.xlu2 %541 }
 0x2eb   : > { %v560_v9 = vsub.f32 %v1631_v24, %v542_v22 }
 0x2ed   : > { %v570_v23 = vmul.f32 1.442695, %v560_v9 }
 0x2ef   : > { %1340 = vpow2.f32 %v570_v23 }
 0x2f0   : > { %1342 = vpow2.f32 %v574_v27 }
 0x2f2   : > { %v551_v1 = vpop.xlane.xlu2 %550 }
 0x2f3   : > { %v545_v58 = vpop.xlane.xlu1 %544  ;;  %v563_v29 = vsub.f32 %v1637_v47, %v551_v1 }
 0x2f4   : > { %v561_v63 = vsub.f32 %v1633_v33, %v545_v58 }
 0x2f5   : > { %v1341_v28 = vpop.eup %1340  ;;  %v576_v8 = vmul.f32 1.442695, %v563_v29 }
 0x2f6   : > { %v572_v30 = vmul.f32 1.442695, %v561_v63  ;;  %v588_v32 = vsel %vm377_vm0, %v1341_v28, 0.0  ;;  %v1343_v34 = vpop.eup %1342 }
 0x2f7   : > { %589 = vadd.xlane.f32.xlu1 %v588_v32  ;;  %v594_v37 = vsel %vm377_vm0, %v1343_v34, 0.0 }
 0x2f8   : > { %1344 = vpow2.f32 %v572_v30 }
 0x2f9   : > { %1346 = vpow2.f32 %v576_v8 }
 0x2fa   : > { %v557_v24 = vpop.xlane.xlu2 %556 }
 0x2fb   : > { %v554_v39 = vpop.xlane.xlu1 %553  ;;  %v565_v36 = vsub.f32 %v1648_v20, %v557_v24 }
 0x2fc   : > { %v564_v35 = vsub.f32 %v1639_v56, %v554_v39 }
 0x2fd   : > { %v580_v41 = vmul.f32 1.442695, %v565_v36 }
 0x2fe   : > { %v1345_v17 = vpop.eup %1344  ;;  %v578_v33 = vmul.f32 1.442695, %v564_v35 }
 0x2ff   : > { %595 = vadd.xlane.f32.xlu1 %v594_v37  ;;  %v591_v47 = vsel %vm377_vm0, %v1345_v17, 0.0  ;;  %v758_v38 = vpack.c.bf16 %v1345_v17, %v1341_v28  ;;  %v1347_v44 = vpop.eup %1346 }
 0x300   : > { %1348 = vpow2.f32 %v578_v33  ;;  %592 = vadd.xlane.f32.xlu2 %v591_v47  ;;  %v597_v45 = vsel %vm377_vm0, %v1347_v44, 0.0  ;;  %v759_v12 = vpack.c.bf16 %v1347_v44, %v1343_v34 }
 0x301   : > { %1237 = vmatmul.msk.bf16.gmra.mxu3 %vm377_vm0, %v758_v38  ;;  %1243 = vmatmul.msk.bf16.gmra.mxu2 %vm377_vm0, %v758_v38 }
 0x302   : > { %v587_v56 = vpop.xlane.xlu2 %586 }
 0x303   : > { %1350 = vrcp.f32 %v587_v56  ;;  %v584_v42 = vpop.xlane.xlu1 %583 }
 0x304   : > { %1352 = vrcp.f32 %v584_v42 }
 0x305   : > { %1354 = vpow2.f32 %v580_v41 }
 0x306   : > { %v1349_v20 = vpop.eup %1348 }
 0x307   : > { %v600_v46 = vsel %vm377_vm0, %v1349_v20, 0.0 }
 0x308   : > { %598 = vadd.xlane.f32.xlu2 %v597_v45  ;;  %601 = vadd.xlane.f32.xlu1 %v600_v46 }
 0x309   : > { %v1694_v48 = vpop.eup %1350 }
 0x30a   : > { %v1696_v51 = vpop.eup %1352  ;;  %v883_v53 = vmul.f32 %v1694_v48, %v786_v50 }
 0x30b   : > { %v882_v54 = vmul.f32 %v1696_v51, %v784_v4  ;;  %v1355_v55 = vpop.eup %1354 }
 0x30c   : > { %v907_v60 = vmul.f32 %v883_v53, %v1555_v18  ;;  %v603_v10 = vsel %vm377_vm0, %v1355_v55, 0.0  ;;  %v899_v16 = vpack.c.bf16 %v883_v53, %v883_v53  ;;  %v760_v6 = vpack.c.bf16 %v1355_v55, %v1349_v20 }
 0x30d   : > { %v906_v61 = vmul.f32 %v882_v54, %v1547_v7  ;;  %v898_v14 = vpack.c.bf16 %v882_v54, %v882_v54 }
 0x30e   : > { %v915_v2 = vpack.c.bf16 %v907_v60, %v907_v60  ;;  %v947_v15 = vunpack.c.l.b16 %v899_v16 }
 0x30f   : > { %v914_v3 = vpack.c.bf16 %v906_v61, %v906_v61  ;;  %v946_v19 = vunpack.c.l.b16 %v898_v14 }
 0x310   : > { %604 = vadd.xlane.f32.xlu2 %v603_v10  ;;  %v1703_v59 = vunpack.c.l.b16 %v915_v2 }
 0x311   : > { %1238 = vmatmul.msk.bf16.gmra.mxu3 %vm377_vm0, %v759_v12  ;;  %1244 = vmatmul.msk.bf16.gmra.mxu2 %vm377_vm0, %v759_v12  ;;  %v1707_v13 = vunpack.c.l.b16 %v914_v3  ;;  %v954_v21 = vpack.c.b16 %v947_v15, %v946_v19 }
 0x313   : > { %v982_v0 = vpack.c.b16 %v1703_v59, %v1707_v13 }
 0x321   : > { %1239 = vmatmul.msk.bf16.gmra.mxu3 %vm377_vm0, %v760_v6  ;;  %1245 = vmatmul.msk.bf16.gmra.mxu2 %vm377_vm0, %v760_v6 }
 0x322   : > { %958 = vrot.lane.b32.xlu1 %v954_v21, %s1434_s13 }
 0x357   : > { %v1714_v22 = vpop.f32.mrf.mxu2 }
 0x35f   : > { %v1716_v9 = vpop.f32.mrf.mxu2 }
 0x360   : > { %v891_v59 = vmul.f32 %v1694_v48, %v1716_v9 }
 0x362   : > { %v923_v48 = vmul.f32 %v891_v59, %v1555_v18 }
 0x36a   : > { %v590_v5 = vpop.xlane.xlu1 %589 }
 0x36b   : > { %1356 = vrcp.f32 %v590_v5 }
 0x371   : > { %v1357_v58 = vpop.eup %1356 }
 0x372   : > { %v596_v32 = vpop.xlane.xlu1 %595 }
 0x373   : > { %v593_v23 = vpop.xlane.xlu2 %592 }
 0x374   : > { %1358 = vrcp.f32 %v593_v23 }
 0x375   : > { %1360 = vrcp.f32 %v596_v32 }
 0x37a   : > { %v1359_v28 = vpop.eup %1358 }
 0x37b   : > { %v599_v17 = vpop.xlane.xlu2 %598  ;;  %v1721_v4 = vpop.eup %1360 }
 0x37c   : > { %1362 = vrcp.f32 %v599_v17  ;;  %v602_v42 = vpop.xlane.xlu1 %601 }
 0x37d   : > { %1364 = vrcp.f32 %v602_v42 }
 0x382   : > { %v1725_v41 = vpop.eup %1362 }
 0x383   : > { %v605_v61 = vpop.xlane.xlu2 %604  ;;  %v1365_v19 = vpop.eup %1364 }
 0x384   : > { %v789_v27 = vpop.f32.mrf.mxu3  ;;  %v867_v1 = vpop.f32.mrf.mxu2  ;;  %1366 = vrcp.f32 %v605_v61 }
 0x385   : > { %v884_v63 = vmul.f32 %v1357_v58, %v789_v27 }
 0x387   : > { %v900_v8 = vpack.c.bf16 %v884_v63, %v884_v63 }
 0x389   : > { %v948_v39 = vunpack.c.l.b16 %v900_v8 }
 0x38a   : > { %v1367_v5 = vpop.eup %1366 }
 0x38c   : > { %v791_v29 = vpop.f32.mrf.mxu3  ;;  %v869_v30 = vpop.f32.mrf.mxu2 }
 0x38d   : > { %v885_v24 = vmul.f32 %v1359_v28, %v791_v29  ;;  %v893_v29 = vmul.f32 %v1359_v28, %v869_v30 }
 0x38f   : > { %v901_v34 = vpack.c.bf16 %v885_v24, %v885_v24  ;;  %v909_v17 = vmul.f32 %v885_v24, %v1561_v26  ;;  %v925_v30 = vmul.f32 %v893_v29, %v1561_v26 }
 0x391   : > { %v949_v35 = vunpack.c.l.b16 %v901_v34  ;;  %v933_v26 = vpack.c.bf16 %v925_v30, %v925_v30 }
 0x393   : > { %v955_v36 = vpack.c.b16 %v949_v35, %v948_v39  ;;  %v892_v39 = vmul.f32 %v1357_v58, %v867_v1  ;;  %v917_v1 = vpack.c.bf16 %v909_v17, %v909_v17  ;;  %v1005_v61 = vunpack.c.l.b16 %v933_v26 }
 0x394   : > { %v794_v33 = vpop.f32.mrf.mxu3  ;;  %v1718_v37 = vpop.f32.mrf.mxu2 }
 0x395   : > { %960 = vrot.lane.b32.xlu2 %v955_v36, %s1434_s13  ;;  %v886_v47 = vmul.f32 %v1721_v4, %v794_v33  ;;  %v924_v13 = vmul.f32 %v892_v39, %v1551_v11  ;;  %v894_v18 = vmul.f32 %v1721_v4, %v1718_v37  ;;  %v959_v4 = vpop.permute.xlu1 %958 }
 0x397   : > { %v910_v38 = vmul.f32 %v886_v47, %v1559_v25  ;;  %v902_v44 = vpack.c.bf16 %v886_v47, %v886_v47  ;;  %v932_v9 = vpack.c.bf16 %v924_v13, %v924_v13 }
 0x399   : > { %v918_v46 = vpack.c.bf16 %v910_v38, %v910_v38  ;;  %v950_v54 = vunpack.c.l.b16 %v902_v44 }
 0x39b   : > { %v978_v2 = vunpack.c.l.b16 %v918_v46 }
 0x39c   : > { %v796_v56 = vpop.f32.mrf.mxu3  ;;  %v1728_v45 = vpop.f32.mrf.mxu2 }
 0x39d   : > { %v887_v20 = vmul.f32 %v1725_v41, %v796_v56 }
 0x39f   : > { %v903_v50 = vpack.c.bf16 %v887_v20, %v887_v20  ;;  %v911_v53 = vmul.f32 %v887_v20, %v1567_v31 }
 0x3a1   : > { %v919_v55 = vpack.c.bf16 %v911_v53, %v911_v53  ;;  %v951_v60 = vunpack.c.l.b16 %v903_v50 }
 0x3a3   : > { %v979_v10 = vunpack.c.l.b16 %v919_v55  ;;  %v956_v12 = vpack.c.b16 %v951_v60, %v950_v54 }
 0x3a4   : > { %v799_v3 = vpop.f32.mrf.mxu3  ;;  %v877_v14 = vpop.f32.mrf.mxu2 }
 0x3a5   : > { %962 = vrot.lane.b32.xlu1 %v956_v12, %s1434_s13  ;;  %v984_v16 = vpack.c.b16 %v979_v10, %v978_v2  ;;  %v888_v15 = vmul.f32 %v1365_v19, %v799_v3  ;;  %v896_v6 = vmul.f32 %v1365_v19, %v877_v14  ;;  %v931_v2 = vpack.c.bf16 %v923_v48, %v923_v48 }
 0x3a6   : > { %v926_v19 = vmul.f32 %v894_v18, %v1559_v25 }
 0x3a7   : > { %990 = vrot.lane.b32.xlu0 %v984_v16, %s1435_s18  ;;  %v912_v21 = vmul.f32 %v888_v15, %v1577_v40  ;;  %v928_v23 = vmul.f32 %v896_v6, %v1577_v40  ;;  %v904_v32 = vpack.c.bf16 %v888_v15, %v888_v15  ;;  %v908_v40 = vmul.f32 %v884_v63, %v1551_v11 }
 0x3a8   : > { %v977_v11 = vunpack.c.l.b16 %v917_v1  ;;  %v1003_v14 = vunpack.c.l.b16 %v931_v2 }
 0x3a9   : > { %v920_v36 = vpack.c.bf16 %v912_v21, %v912_v21  ;;  %v936_v38 = vpack.c.bf16 %v928_v23, %v928_v23  ;;  %v952_v56 = vunpack.c.l.b16 %v904_v32  ;;  %v916_v50 = vpack.c.bf16 %v908_v40, %v908_v40 }
 0x3aa   : > { %v934_v21 = vpack.c.bf16 %v926_v19, %v926_v19 }
 0x3ab   : > { %v980_v58 = vunpack.c.l.b16 %v920_v36  ;;  %v1008_v46 = vunpack.c.l.b16 %v936_v38  ;;  %v976_v60 = vunpack.c.l.b16 %v916_v50 }
 0x3ac   : > { %v801_v27 = vpop.f32.mrf.mxu3  ;;  %v879_v34 = vpop.f32.mrf.mxu2 }
 0x3ad   : > { %v889_v8 = vmul.f32 %v1367_v5, %v801_v27  ;;  %986 = vrot.lane.b32.xlu1 %v982_v0, %s1435_s18  ;;  %v897_v35 = vmul.f32 %v1367_v5, %v879_v34  ;;  %v983_v10 = vpack.c.b16 %v977_v11, %v976_v60 }
 0x3af   : > { %v905_v33 = vpack.c.bf16 %v889_v8, %v889_v8  ;;  %v913_v47 = vmul.f32 %v889_v8, %v1581_v43  ;;  %v929_v28 = vmul.f32 %v897_v35, %v1581_v43  ;;  %v890_v43 = vmul.f32 %v1696_v51, %v1714_v22 }
 0x3b0   : > { %v1004_v51 = vunpack.c.l.b16 %v932_v9  ;;  %v895_v22 = vmul.f32 %v1725_v41, %v1728_v45  ;;  %v1006_v45 = vunpack.c.l.b16 %v934_v21 }
 0x3b1   : > { %v921_v42 = vpack.c.bf16 %v913_v47, %v913_v47  ;;  %v953_v44 = vunpack.c.l.b16 %v905_v33  ;;  %v937_v0 = vpack.c.bf16 %v929_v28, %v929_v28  ;;  %v922_v55 = vmul.f32 %v890_v43, %v1547_v7 }
 0x3b2   : > { %v1011_v3 = vpack.c.b16 %v1005_v61, %v1004_v51  ;;  %v927_v16 = vmul.f32 %v895_v22, %v1567_v31  ;;  %v1023_v31 = vsel %vm377_vm0, %v1589_v49, %v959_v4 }
 0x3b3   : > { %v981_v24 = vunpack.c.l.b16 %v921_v42  ;;  %v957_v20 = vpack.c.b16 %v953_v44, %v952_v56  ;;  %v1009_v63 = vunpack.c.l.b16 %v937_v0  ;;  %v930_v12 = vpack.c.bf16 %v922_v55, %v922_v55 }
 0x3b4   : > { %v935_v15 = vpack.c.bf16 %v927_v16, %v927_v16 }
 0x3b5   : > { %964 = vrot.lane.b32.xlu2 %v957_v20, %s1434_s13  ;;  %v985_v53 = vpack.c.b16 %v981_v24, %v980_v58  ;;  %v1013_v54 = vpack.c.b16 %v1009_v63, %v1008_v46  ;;  %v1002_v7 = vunpack.c.l.b16 %v930_v12 }
 0x3b6   : > { %v1007_v41 = vunpack.c.l.b16 %v935_v15 }
 0x3b7   : > { %992 = vrot.lane.b32.xlu1 %v985_v53, %s1435_s18  ;;  %1020 = vrot.lane.b32.xlu0 %v1013_v54, %s1436_s8  ;;  %v1010_v6 = vpack.c.b16 %v1003_v14, %v1002_v7 }
 0x3b8   : > { %v1012_v5 = vpack.c.b16 %v1007_v41, %v1006_v45 }
 0x3bd   : > { %988 = vrot.lane.b32.xlu2 %v983_v10, %s1435_s18 }
 0x3bf   : > { %1016 = vrot.lane.b32.xlu1 %v1011_v3, %s1436_s8 }
 0x3c5   : > { %1014 = vrot.lane.b32.xlu2 %v1010_v6, %s1436_s8 }
 0x3cd   : > { %1018 = vrot.lane.b32.xlu2 %v1012_v5, %s1436_s8 }
 0x3ef   : > { %v961_v37 = vpop.permute.xlu2 %960 }
 0x3f0   : > { %v1025_v20 = vsel %vm377_vm0, %v1601_v52, %v961_v37 }
 0x40f   : > { %v965_v23 = vpop.permute.xlu2 %964 }
 0x410   : > { %v1029_v28 = vsel %vm377_vm0, %v1614_v62, %v965_v23 }
 0x417   : > { %v989_v27 = vpop.permute.xlu2 %988  ;;  %v963_v29 = vpop.permute.xlu1 %962 }
 0x418   : > { %v1027_v36 = vsel %vm377_vm0, %v1609_v57, %v963_v29  ;;  %v1033_v46 = vsel %vm727_vm1, %v1025_v20, %v989_v27 }
 0x419   : > { %v991_v39 = vpop.permute.xlu0 %990 }
 0x41a   : > { %v1035_v49 = vsel %vm727_vm1, %v1027_v36, %v991_v39 }
 0x41f   : > { %v1015_v25 = vpop.permute.xlu2 %1014  ;;  %v987_v32 = vpop.permute.xlu1 %986 }
 0x420   : > { %v1031_v8 = vsel %vm727_vm1, %v1023_v31, %v987_v32 }
 0x421   : > { %v1040_v34 = vsel %vm1038_vm2, %v1031_v8, %v1015_v25 }
 0x422   : > { %v1051_v35 = vunpack.c.l.b16 %v1040_v34  ;;  %v1052_v17 = vunpack.c.h.b16 %v1040_v34 }
 0x424   : > { %v1059_v33 = vpack.c.b16 %v1051_v35, %v1051_v35  ;;  %v1060_v47 = vpack.c.b16 %v1052_v17, %v1052_v17 }
 0x426   : > { %1075 = vst [vmem:[%s1769_s15] sm:$0xf] %v1059_v33 }
 0x427   : > { %1076 = vst [vmem:[%s1769_s15 + $0x4] sm:$0xf] %v1060_v47  ;;  %v1019_v40 = vpop.permute.xlu2 %1018 }
 0x428   : > { %v1044_v38 = vsel %vm1038_vm2, %v1035_v49, %v1019_v40 }
 0x429   : > { %v1055_v57 = vunpack.c.l.b16 %v1044_v38  ;;  %v1056_v30 = vunpack.c.h.b16 %v1044_v38  ;;  %v993_v56 = vpop.permute.xlu1 %992  ;;  %v1021_v42 = vpop.permute.xlu0 %1020 }
 0x42a   : > { %v1037_v44 = vsel %vm727_vm1, %v1029_v28, %v993_v56 }
 0x42b   : > { %v1063_v59 = vpack.c.b16 %v1055_v57, %v1055_v57  ;;  %v1064_v13 = vpack.c.b16 %v1056_v30, %v1056_v30  ;;  %v1046_v0 = vsel %vm1038_vm2, %v1037_v44, %v1021_v42 }
 0x42c   : > { %v1057_v1 = vunpack.c.l.b16 %v1046_v0  ;;  %v1058_v58 = vunpack.c.h.b16 %v1046_v0 }
 0x42d   : > { %1079 = vst [vmem:[%s1769_s15 + $0x10] sm:$0xf] %v1063_v59 }
 0x42e   : > { %1080 = vst [vmem:[%s1769_s15 + $0x14] sm:$0xf] %v1064_v13  ;;  %v1065_v24 = vpack.c.b16 %v1057_v1, %v1057_v1  ;;  %v1066_v62 = vpack.c.b16 %v1058_v58, %v1058_v58 }
 0x430   : > { %1081 = vst [vmem:[%s1769_s15 + $0x18] sm:$0xf] %v1065_v24 }
 0x431   : > { %1082 = vst [vmem:[%s1769_s15 + $0x1c] sm:$0xf] %v1066_v62  ;;  %v1017_v63 = vpop.permute.xlu1 %1016 }
 0x432   : > { %v1042_v43 = vsel %vm1038_vm2, %v1033_v46, %v1017_v63 }
 0x433   : > { %v1053_v50 = vunpack.c.l.b16 %v1042_v43  ;;  %v1054_v26 = vunpack.c.h.b16 %v1042_v43 }
 0x435   : > { %v1061_v53 = vpack.c.b16 %v1053_v50, %v1053_v50  ;;  %v1062_v52 = vpack.c.b16 %v1054_v26, %v1054_v26 }
 0x437   : > { %1077 = vst [vmem:[%s1769_s15 + $0x8] sm:$0xf] %v1061_v53 }
 0x438   : > { %1078 = vst [vmem:[%s1769_s15 + $0xc] sm:$0xf] %v1062_v52 }
 0x439   : > { %1395 = shalt.err (!%p1392_p3)
}
 0x43a   : > { %s1437_s9 = smov 4  }
 0x43b   : > { %1261 = dma.vmem_to_hbm [thread:$0]  (%p1516_p5), %s1097_s28, 512, %s1099_s21, %s1084_s22, %s1435_s18, %s1435_s18, %s1437_s9  }
 0x43c PF: > { %p1267_p4 = scmp.ge.s32.totalorder %s1430_s27, 2  ;;  %s1113_s15 = sand.u32 1, %s1418_s24  }
 0x43d   : > { %s1114_s19 = scalar_lea.sflag [#allocation3], %s1113_s15 }
 0x43e   : > { %p1264_p7 = pnand %p1267_p4, %p1520_p6 }
 0x440   : > { %p1265_p8 = pneg %p1264_p7 }
 0x442   : > { %1413 = dma.done.wait (%p1265_p8), %s1114_s19, 512  }
 0x443   : > { %1415 = vsyncadd (%p1265_p8), %s1114_s19, 4294966784  ;;  %p17_p9 = scmp.ge.s32.totalorder %s1503_s30, 4   ;;  %s1835_s24 = smov %s1422_s25 }
 0x444   : > { %s1836_s25 = smov %s1426_s26  ;;  %s1837_s26 = smov %s1514_s10 }
 0x445   : > { %s1838_s27 = smov %s1503_s30  ;;  %19 = sbr.rel (!%p17_p9) target bundleno = 3 (0x3), region = 92 }
 0x44a   :  { %1120 = vsyncpa [#allocation3], 1 }
 0x44b   :  { %1122 = vsyncpa [#allocation3 + $0x1], 1 }

</bundles_post_ra>
